<compile_context>
chip_gen: v5e
topology: v5e:2x2
jax: 0.10.0
libtpu: 0.0.40
codegen_flags: <defaults>
</compile_context>

<pallas_src>
import jax
import jax.numpy as jnp
from jax import lax
from jax.experimental import pallas as pl
from jax.experimental.pallas import tpu as pltpu

BN_EPS = 1e-5          # PyTorch BatchNorm1d default eps
_NEG_BIG = -1e30       # logit value for padded cluster lanes -> softmax ~ 0


def _cluster_heads_kernel(text_ref, image_ref, w1_ref, gb_ref, w2_ref, b2_ref,
                          o_text_ref, o_image_ref):
    """Both heads in a single invocation (unrolled Python loop over h).

    text/image: [B, D]  f32         w1: [2, D, D]  bf16
    gb:         [2, 2, D] f32       w2: [2, D, Cp] bf16 (zero-padded cols)
    b2:         [2, 1, Cp] f32 (-1e30 in padded cols)
    outputs:    [B, Cp] f32 softmax probabilities (padded cols ~ 0)
    """
    x_refs = (text_ref, image_ref)
    o_refs = (o_text_ref, o_image_ref)
    for h in range(2):  # unrolled: both heads inside ONE grid step
        x = x_refs[h][...].astype(jnp.bfloat16)

        # Linear 1 (MXU, bf16 in / f32 accumulate).  Bias omitted: it is
        # cancelled exactly by the batch-mean subtraction of training-mode
        # BatchNorm below.
        # TODO(synk): an eval-mode BN path (running_mean/var) would need the
        # Linear-1 bias restored and running statistics passed in.
        pre = jnp.dot(x, w1_ref[h], preferred_element_type=jnp.float32)

        # BatchNorm1d (training mode, biased batch stats), single centered
        # pass: d is reused for the normalization.
        mean = jnp.mean(pre, axis=0, keepdims=True)
        d = pre - mean
        var = jnp.mean(d * d, axis=0, keepdims=True)
        gb = gb_ref[h]                          # [2, D]: row0 gamma, row1 beta
        act = d * lax.rsqrt(var + BN_EPS) * gb[0:1, :] + gb[1:2, :]

        # ReLU
        act = jnp.maximum(act, 0.0)

        # Linear 2 (MXU) into the lane-padded cluster dim; padded columns
        # carry bias -1e30 so softmax assigns them ~0 probability.
        logits = jnp.dot(act.astype(jnp.bfloat16), w2_ref[h],
                         preferred_element_type=jnp.float32) + b2_ref[h]

        # Softmax over the cluster dim.  Exact normalization (plain divide):
        # output rows sum to 1 to f32 rounding (fixes the previous approx-
        # reciprocal failure).
        m = jnp.max(logits, axis=1, keepdims=True)
        e = jnp.exp(logits - m)
        probs = e / jnp.sum(e, axis=1, keepdims=True)
        o_refs[h][...] = probs.astype(o_refs[h].dtype)


def _cluster_heads_call(text, image, w1, gb, w2, b2):
    B, D = text.shape
    Cp = w2.shape[-1]

    flops = 2 * (2 * B * D * D + 2 * B * D * Cp + 12 * B * D + 6 * B * Cp)
    transcendentals = 2 * (B * Cp + D)                    # exp + rsqrt
    bytes_accessed = (text.size * 4 + image.size * 4 + w1.size * 2
                      + gb.size * 4 + w2.size * 2 + b2.size * 4
                      + 2 * B * Cp * 4)

    return pl.pallas_call(
        _cluster_heads_kernel,
        out_shape=(jax.ShapeDtypeStruct((B, Cp), jnp.float32),
                   jax.ShapeDtypeStruct((B, Cp), jnp.float32)),
        grid=(1,),   # single step: both heads in one invocation (v5e/v6e win)
        in_specs=[
            pl.BlockSpec((B, D), lambda i: (0, 0)),           # text
            pl.BlockSpec((B, D), lambda i: (0, 0)),           # image
            pl.BlockSpec((2, D, D), lambda i: (0, 0, 0)),     # w1 (bf16)
            pl.BlockSpec((2, 2, D), lambda i: (0, 0, 0)),     # gamma/beta
            pl.BlockSpec((2, D, Cp), lambda i: (0, 0, 0)),    # w2 (bf16, pad)
            pl.BlockSpec((2, 1, Cp), lambda i: (0, 0, 0)),    # b2 (pad)
        ],
        out_specs=(
            pl.BlockSpec((B, Cp), lambda i: (0, 0)),
            pl.BlockSpec((B, Cp), lambda i: (0, 0)),
        ),
        # NOTE(v7x): to split the two heads across the 2 TensorCores instead,
        # switch to grid=(2,) + dimension_semantics=("parallel",) with a
        # stacked [2,B,D] activation; at B=8, D=128 the single-step form wins.
        compiler_params=pltpu.CompilerParams(
            dimension_semantics=("arbitrary",)),
        cost_estimate=pl.CostEstimate(
            flops=int(flops),
            transcendentals=int(transcendentals),
            bytes_accessed=int(bytes_accessed)),
    )(text, image, w1, gb, w2, b2)


def pack_cluster_head_params(text_params, image_params):
    """Init-time packing — call ONCE, never in the per-step forward path.

    * Linear weights -> bf16, [in, out] layout, stacked along a head axis.
    * w2 zero-padded / b2 padded with -1e30 to lane-dense Cp = ceil(C/128)*128.
    * gamma/beta packed into one [2, 2, D] f32 array.
    * Linear-1 bias dropped (exactly cancelled by training-mode BN).
    """
    C = text_params[4].shape[1]
    Cp = int(pl.cdiv(C, 128) * 128)

    def one(params):
        w1, _b1, gamma, beta, w2, b2 = params
        D = w1.shape[0]
        w2p = jnp.zeros((D, Cp), jnp.bfloat16).at[:, :C].set(
            w2.astype(jnp.bfloat16))
        b2p = jnp.full((1, Cp), _NEG_BIG, jnp.float32).at[:, :C].set(
            b2.reshape(1, C).astype(jnp.float32))
        gb = jnp.concatenate([gamma.reshape(1, D), beta.reshape(1, D)],
                             axis=0).astype(jnp.float32)
        return w1.astype(jnp.bfloat16), gb, w2p, b2p

    t, i = one(text_params), one(image_params)
    w1 = jnp.stack([t[0], i[0]], axis=0)   # [2, D, D]   bf16
    gb = jnp.stack([t[1], i[1]], axis=0)   # [2, 2, D]   f32
    w2 = jnp.stack([t[2], i[2]], axis=0)   # [2, D, Cp]  bf16
    b2 = jnp.stack([t[3], i[3]], axis=0)   # [2, 1, Cp]  f32
    return (w1, gb, w2, b2, C)


def cluster_head_forward(text, image, packed):
    """ClusterHead.forward(text, image) -> (logit_text, logit_image)
    (softmax probabilities, exactly like the PyTorch module's output)."""
    w1, gb, w2, b2, C = packed
    probs_t, probs_i = _cluster_heads_call(text, image, w1, gb, w2, b2)
    return probs_t[:, :C], probs_i[:, :C]


def init_head_params(key, in_dim, num_clusters):
    """Deterministic synthetic parameter init (shapes from the nn.Module);
    weights stored [in, out] (transpose of PyTorch's [out, in])."""
    k1, k2, k3, k4, k5, k6 = jax.random.split(key, 6)
    # trunc_normal_(std=0.02) approximated with a clipped normal (synthetic).
    w1 = jnp.clip(0.02 * jax.random.normal(k1, (in_dim, in_dim)), -0.04, 0.04)
    b1 = 0.01 * jax.random.normal(k2, (1, in_dim))
    gamma = 1.0 + 0.05 * jax.random.normal(k3, (1, in_dim))
    beta = 0.05 * jax.random.normal(k4, (1, in_dim))
    w2 = jnp.clip(0.02 * jax.random.normal(k5, (in_dim, num_clusters)),
                  -0.04, 0.04)
    b2 = 0.01 * jax.random.normal(k6, (1, num_clusters))
    return tuple(p.astype(jnp.float32) for p in (w1, b1, gamma, beta, w2, b2))


def _reference_head(x, params):
    """Pure-JAX f32 reference mirroring the PyTorch head (includes the
    Linear-1 bias; its exact cancellation under training-mode BN is covered by
    the closeness asserts in __main__)."""
    w1, b1, gamma, beta, w2, b2 = params
    h = x @ w1 + b1
    mean = jnp.mean(h, axis=0, keepdims=True)
    var = jnp.mean((h - mean) ** 2, axis=0, keepdims=True)
    h = (h - mean) / jnp.sqrt(var + BN_EPS) * gamma + beta
    h = jnp.maximum(h, 0.0)
    logits = h @ w2 + b2
    return jax.nn.softmax(logits, axis=1)


if __name__ == "__main__":
    B, in_dim, num_clusters = 8, 128, 10

    key = jax.random.PRNGKey(0)
    k_text_x, k_img_x, k_text_p, k_img_p = jax.random.split(key, 4)

    text = jax.random.normal(k_text_x, (B, in_dim), dtype=jnp.float32)
    image = jax.random.normal(k_img_x, (B, in_dim), dtype=jnp.float32)

    text_params = init_head_params(k_text_p, in_dim, num_clusters)
    image_params = init_head_params(k_img_p, in_dim, num_clusters)

    # Pack/stack/cast parameters ONCE (init-time), not per forward call.
    packed = pack_cluster_head_params(text_params, image_params)

    logit_text, logit_image = cluster_head_forward(text, image, packed)
    jax.block_until_ready((logit_text, logit_image))

    # Correctness vs a pure-JAX f32 reference.  The kernel streams weights in
    # bf16 (f32 accumulation), so allow 5e-3 absolute on probabilities (<= 1);
    # any structural error would be O(0.1).
    ref_text = _reference_head(text, text_params)
    ref_image = _reference_head(image, image_params)
    assert logit_text.shape == (B, num_clusters)
    assert logit_image.shape == (B, num_clusters)
    assert float(jnp.max(jnp.abs(logit_text - ref_text))) < 5e-3
    assert float(jnp.max(jnp.abs(logit_image - ref_image))) < 5e-3
    # Exact softmax normalization inside the kernel: rows sum to 1 tightly.
    assert float(jnp.max(jnp.abs(jnp.sum(logit_text, axis=1) - 1.0))) < 1e-3
    assert float(jnp.max(jnp.abs(jnp.sum(logit_image, axis=1) - 1.0))) < 1e-3

    print("KERNEL_OK")
</pallas_src>

<mosaic_0001>
module attributes {stable_mosaic.version = 11 : i64} {
  func.func @_cluster_heads_kernel(%arg0: i32, %arg1: memref<8x128xf32, #tpu.memory_space<vmem>>, %arg2: memref<8x128xf32, #tpu.memory_space<vmem>>, %arg3: memref<2x128x128xbf16, #tpu.memory_space<vmem>>, %arg4: memref<2x2x128xf32, #tpu.memory_space<vmem>>, %arg5: memref<2x128x128xbf16, #tpu.memory_space<vmem>>, %arg6: memref<2x1x128xf32, #tpu.memory_space<vmem>>, %arg7: memref<8x128xf32, #tpu.memory_space<vmem>>, %arg8: memref<8x128xf32, #tpu.memory_space<vmem>>) attributes {dimension_semantics = [#tpu.dimension_semantics<arbitrary>], iteration_bounds = array<i64: 1>, scalar_prefetch = 0 : i64, scratch_operands = 0 : i64, tpu.core_type = #tpu.core_type<tc>, window_params = [{pipeline_mode = #tpu.pipeline_mode<synchronous>, transform_indices = @transform_0, window_bounds = array<i64: 8, 128>}, {pipeline_mode = #tpu.pipeline_mode<synchronous>, transform_indices = @transform_1, window_bounds = array<i64: 8, 128>}, {pipeline_mode = #tpu.pipeline_mode<synchronous>, transform_indices = @transform_2, window_bounds = array<i64: 2, 128, 128>}, {pipeline_mode = #tpu.pipeline_mode<synchronous>, transform_indices = @transform_3, window_bounds = array<i64: 2, 2, 128>}, {pipeline_mode = #tpu.pipeline_mode<synchronous>, transform_indices = @transform_4, window_bounds = array<i64: 2, 128, 128>}, {pipeline_mode = #tpu.pipeline_mode<synchronous>, transform_indices = @transform_5, window_bounds = array<i64: 2, 1, 128>}, {pipeline_mode = #tpu.pipeline_mode<synchronous>, transform_indices = @transform_6, window_bounds = array<i64: 8, 128>}, {pipeline_mode = #tpu.pipeline_mode<synchronous>, transform_indices = @transform_7, window_bounds = array<i64: 8, 128>}]} {
    %c0 = arith.constant 0 : index
    %c0_0 = arith.constant 0 : index
    %0 = vector.load %arg1[%c0, %c0_0] : memref<8x128xf32, #tpu.memory_space<vmem>>, vector<8x128xf32>
    %1 = arith.truncf %0 : vector<8x128xf32> to vector<8x128xbf16>
    %c0_1 = arith.constant 0 : index
    %c0_2 = arith.constant 0 : index
    %c0_3 = arith.constant 0 : index
    %2 = vector.load %arg3[%c0_1, %c0_2, %c0_3] : memref<2x128x128xbf16, #tpu.memory_space<vmem>>, vector<1x128x128xbf16>
    %3 = vector.shape_cast %2 : vector<1x128x128xbf16> to vector<128x128xbf16>
    %cst = arith.constant dense<0.000000e+00> : vector<8x128xf32>
    %4 = tpu.matmul %1, %3, %cst {dimension_numbers = #tpu.dot_dimension_numbers<[1], [0], [0], [1], [0, 0, 1, 1], [], []>} : vector<8x128xbf16>, vector<128x128xbf16>, vector<8x128xf32> -> vector<8x128xf32>
    %cst_4 = arith.constant dense<0.000000e+00> : vector<128xf32>
    %5 = vector.multi_reduction <add>, %4, %cst_4 [0] : vector<8x128xf32> to vector<128xf32>
    %6 = vector.shape_cast %5 : vector<128xf32> to vector<1x128xf32>
    %cst_5 = arith.constant 8.000000e+00 : f32
    %7 = vector.broadcast %cst_5 : f32 to vector<1x128xf32>
    %8 = arith.divf %6, %7 : vector<1x128xf32>
    %9 = vector.broadcast %8 : vector<1x128xf32> to vector<8x128xf32>
    %10 = arith.subf %4, %9 : vector<8x128xf32>
    %11 = arith.mulf %10, %10 : vector<8x128xf32>
    %cst_6 = arith.constant dense<0.000000e+00> : vector<128xf32>
    %12 = vector.multi_reduction <add>, %11, %cst_6 [0] : vector<8x128xf32> to vector<128xf32>
    %13 = vector.shape_cast %12 : vector<128xf32> to vector<1x128xf32>
    %cst_7 = arith.constant 8.000000e+00 : f32
    %14 = vector.broadcast %cst_7 : f32 to vector<1x128xf32>
    %15 = arith.divf %13, %14 : vector<1x128xf32>
    %c0_8 = arith.constant 0 : index
    %c0_9 = arith.constant 0 : index
    %c0_10 = arith.constant 0 : index
    %16 = vector.load %arg4[%c0_8, %c0_9, %c0_10] : memref<2x2x128xf32, #tpu.memory_space<vmem>>, vector<1x2x128xf32>
    %17 = vector.shape_cast %16 : vector<1x2x128xf32> to vector<2x128xf32>
    %cst_11 = arith.constant 9.99999974E-6 : f32
    %18 = vector.broadcast %cst_11 : f32 to vector<1x128xf32>
    %19 = arith.addf %15, %18 : vector<1x128xf32>
    %20 = math.rsqrt %19 : vector<1x128xf32>
    %21 = vector.broadcast %20 : vector<1x128xf32> to vector<8x128xf32>
    %22 = arith.mulf %10, %21 : vector<8x128xf32>
    %23 = vector.extract_strided_slice %17 {offsets = [0, 0], sizes = [1, 128], strides = [1, 1]} : vector<2x128xf32> to vector<1x128xf32>
    %24 = vector.broadcast %23 : vector<1x128xf32> to vector<8x128xf32>
    %25 = arith.mulf %22, %24 : vector<8x128xf32>
    %26 = vector.extract_strided_slice %17 {offsets = [1, 0], sizes = [1, 128], strides = [1, 1]} : vector<2x128xf32> to vector<1x128xf32>
    %27 = vector.broadcast %26 : vector<1x128xf32> to vector<8x128xf32>
    %28 = arith.addf %25, %27 : vector<8x128xf32>
    %cst_12 = arith.constant 0.000000e+00 : f32
    %29 = vector.broadcast %cst_12 : f32 to vector<8x128xf32>
    %30 = arith.maximumf %28, %29 : vector<8x128xf32>
    %31 = arith.truncf %30 : vector<8x128xf32> to vector<8x128xbf16>
    %c0_13 = arith.constant 0 : index
    %c0_14 = arith.constant 0 : index
    %c0_15 = arith.constant 0 : index
    %32 = vector.load %arg5[%c0_13, %c0_14, %c0_15] : memref<2x128x128xbf16, #tpu.memory_space<vmem>>, vector<1x128x128xbf16>
    %33 = vector.shape_cast %32 : vector<1x128x128xbf16> to vector<128x128xbf16>
    %cst_16 = arith.constant dense<0.000000e+00> : vector<8x128xf32>
    %34 = tpu.matmul %31, %33, %cst_16 {dimension_numbers = #tpu.dot_dimension_numbers<[1], [0], [0], [1], [0, 0, 1, 1], [], []>} : vector<8x128xbf16>, vector<128x128xbf16>, vector<8x128xf32> -> vector<8x128xf32>
    %c0_17 = arith.constant 0 : index
    %c0_18 = arith.constant 0 : index
    %c0_19 = arith.constant 0 : index
    %35 = vector.load %arg6[%c0_17, %c0_18, %c0_19] : memref<2x1x128xf32, #tpu.memory_space<vmem>>, vector<1x1x128xf32>
    %36 = vector.shape_cast %35 : vector<1x1x128xf32> to vector<1x128xf32>
    %37 = vector.broadcast %36 : vector<1x128xf32> to vector<8x128xf32>
    %38 = arith.addf %34, %37 : vector<8x128xf32>
    %cst_20 = arith.constant dense<0xFF800000> : vector<8xf32>
    %39 = vector.multi_reduction <maximumf>, %38, %cst_20 [1] : vector<8x128xf32> to vector<8xf32>
    %40 = vector.shape_cast %39 : vector<8xf32> to vector<8x1xf32>
    %41 = vector.broadcast %40 : vector<8x1xf32> to vector<8x128xf32>
    %42 = arith.subf %38, %41 : vector<8x128xf32>
    %43 = math.exp %42 : vector<8x128xf32>
    %cst_21 = arith.constant dense<0.000000e+00> : vector<8xf32>
    %44 = vector.multi_reduction <add>, %43, %cst_21 [1] : vector<8x128xf32> to vector<8xf32>
    %45 = vector.shape_cast %44 : vector<8xf32> to vector<8x1xf32>
    %46 = vector.broadcast %45 : vector<8x1xf32> to vector<8x128xf32>
    %47 = arith.divf %43, %46 : vector<8x128xf32>
    %c0_22 = arith.constant 0 : index
    %c0_23 = arith.constant 0 : index
    %48 = vector.load %arg7[%c0_22, %c0_23] : memref<8x128xf32, #tpu.memory_space<vmem>>, vector<8x128xf32>
    tpu.vector_store %arg7[%c0_22, %c0_23], %47 {strides = array<i32>} : memref<8x128xf32, #tpu.memory_space<vmem>>, vector<8x128xf32>,
    %c0_24 = arith.constant 0 : index
    %c0_25 = arith.constant 0 : index
    %49 = vector.load %arg2[%c0_24, %c0_25] : memref<8x128xf32, #tpu.memory_space<vmem>>, vector<8x128xf32>
    %50 = arith.truncf %49 : vector<8x128xf32> to vector<8x128xbf16>
    %c1 = arith.constant 1 : index
    %c0_26 = arith.constant 0 : index
    %c0_27 = arith.constant 0 : index
    %51 = vector.load %arg3[%c1, %c0_26, %c0_27] : memref<2x128x128xbf16, #tpu.memory_space<vmem>>, vector<1x128x128xbf16>
    %52 = vector.shape_cast %51 : vector<1x128x128xbf16> to vector<128x128xbf16>
    %cst_28 = arith.constant dense<0.000000e+00> : vector<8x128xf32>
    %53 = tpu.matmul %50, %52, %cst_28 {dimension_numbers = #tpu.dot_dimension_numbers<[1], [0], [0], [1], [0, 0, 1, 1], [], []>} : vector<8x128xbf16>, vector<128x128xbf16>, vector<8x128xf32> -> vector<8x128xf32>
    %cst_29 = arith.constant dense<0.000000e+00> : vector<128xf32>
    %54 = vector.multi_reduction <add>, %53, %cst_29 [0] : vector<8x128xf32> to vector<128xf32>
    %55 = vector.shape_cast %54 : vector<128xf32> to vector<1x128xf32>
    %cst_30 = arith.constant 8.000000e+00 : f32
    %56 = vector.broadcast %cst_30 : f32 to vector<1x128xf32>
    %57 = arith.divf %55, %56 : vector<1x128xf32>
    %58 = vector.broadcast %57 : vector<1x128xf32> to vector<8x128xf32>
    %59 = arith.subf %53, %58 : vector<8x128xf32>
    %60 = arith.mulf %59, %59 : vector<8x128xf32>
    %cst_31 = arith.constant dense<0.000000e+00> : vector<128xf32>
    %61 = vector.multi_reduction <add>, %60, %cst_31 [0] : vector<8x128xf32> to vector<128xf32>
    %62 = vector.shape_cast %61 : vector<128xf32> to vector<1x128xf32>
    %cst_32 = arith.constant 8.000000e+00 : f32
    %63 = vector.broadcast %cst_32 : f32 to vector<1x128xf32>
    %64 = arith.divf %62, %63 : vector<1x128xf32>
    %c1_33 = arith.constant 1 : index
    %c0_34 = arith.constant 0 : index
    %c0_35 = arith.constant 0 : index
    %65 = vector.load %arg4[%c1_33, %c0_34, %c0_35] : memref<2x2x128xf32, #tpu.memory_space<vmem>>, vector<1x2x128xf32>
    %66 = vector.shape_cast %65 : vector<1x2x128xf32> to vector<2x128xf32>
    %cst_36 = arith.constant 9.99999974E-6 : f32
    %67 = vector.broadcast %cst_36 : f32 to vector<1x128xf32>
    %68 = arith.addf %64, %67 : vector<1x128xf32>
    %69 = math.rsqrt %68 : vector<1x128xf32>
    %70 = vector.broadcast %69 : vector<1x128xf32> to vector<8x128xf32>
    %71 = arith.mulf %59, %70 : vector<8x128xf32>
    %72 = vector.extract_strided_slice %66 {offsets = [0, 0], sizes = [1, 128], strides = [1, 1]} : vector<2x128xf32> to vector<1x128xf32>
    %73 = vector.broadcast %72 : vector<1x128xf32> to vector<8x128xf32>
    %74 = arith.mulf %71, %73 : vector<8x128xf32>
    %75 = vector.extract_strided_slice %66 {offsets = [1, 0], sizes = [1, 128], strides = [1, 1]} : vector<2x128xf32> to vector<1x128xf32>
    %76 = vector.broadcast %75 : vector<1x128xf32> to vector<8x128xf32>
    %77 = arith.addf %74, %76 : vector<8x128xf32>
    %cst_37 = arith.constant 0.000000e+00 : f32
    %78 = vector.broadcast %cst_37 : f32 to vector<8x128xf32>
    %79 = arith.maximumf %77, %78 : vector<8x128xf32>
    %80 = arith.truncf %79 : vector<8x128xf32> to vector<8x128xbf16>
    %c1_38 = arith.constant 1 : index
    %c0_39 = arith.constant 0 : index
    %c0_40 = arith.constant 0 : index
    %81 = vector.load %arg5[%c1_38, %c0_39, %c0_40] : memref<2x128x128xbf16, #tpu.memory_space<vmem>>, vector<1x128x128xbf16>
    %82 = vector.shape_cast %81 : vector<1x128x128xbf16> to vector<128x128xbf16>
    %cst_41 = arith.constant dense<0.000000e+00> : vector<8x128xf32>
    %83 = tpu.matmul %80, %82, %cst_41 {dimension_numbers = #tpu.dot_dimension_numbers<[1], [0], [0], [1], [0, 0, 1, 1], [], []>} : vector<8x128xbf16>, vector<128x128xbf16>, vector<8x128xf32> -> vector<8x128xf32>
    %c1_42 = arith.constant 1 : index
    %c0_43 = arith.constant 0 : index
    %c0_44 = arith.constant 0 : index
    %84 = vector.load %arg6[%c1_42, %c0_43, %c0_44] : memref<2x1x128xf32, #tpu.memory_space<vmem>>, vector<1x1x128xf32>
    %85 = vector.shape_cast %84 : vector<1x1x128xf32> to vector<1x128xf32>
    %86 = vector.broadcast %85 : vector<1x128xf32> to vector<8x128xf32>
    %87 = arith.addf %83, %86 : vector<8x128xf32>
    %cst_45 = arith.constant dense<0xFF800000> : vector<8xf32>
    %88 = vector.multi_reduction <maximumf>, %87, %cst_45 [1] : vector<8x128xf32> to vector<8xf32>
    %89 = vector.shape_cast %88 : vector<8xf32> to vector<8x1xf32>
    %90 = vector.broadcast %89 : vector<8x1xf32> to vector<8x128xf32>
    %91 = arith.subf %87, %90 : vector<8x128xf32>
    %92 = math.exp %91 : vector<8x128xf32>
    %cst_46 = arith.constant dense<0.000000e+00> : vector<8xf32>
    %93 = vector.multi_reduction <add>, %92, %cst_46 [1] : vector<8x128xf32> to vector<8xf32>
    %94 = vector.shape_cast %93 : vector<8xf32> to vector<8x1xf32>
    %95 = vector.broadcast %94 : vector<8x1xf32> to vector<8x128xf32>
    %96 = arith.divf %92, %95 : vector<8x128xf32>
    %c0_47 = arith.constant 0 : index
    %c0_48 = arith.constant 0 : index
    %97 = vector.load %arg8[%c0_47, %c0_48] : memref<8x128xf32, #tpu.memory_space<vmem>>, vector<8x128xf32>
    tpu.vector_store %arg8[%c0_47, %c0_48], %96 {strides = array<i32>} : memref<8x128xf32, #tpu.memory_space<vmem>>, vector<8x128xf32>,
    return
  }
  func.func @transform_0(%arg0: i32) -> (i32, i32) {
    %c0_i32 = arith.constant 0 : i32
    %c0_i32_0 = arith.constant 0 : i32
    %c0_i32_1 = arith.constant 0 : i32
    return %c0_i32, %c0_i32_0 : i32, i32
  }
  func.func @transform_1(%arg0: i32) -> (i32, i32) {
    %c0_i32 = arith.constant 0 : i32
    %c0_i32_0 = arith.constant 0 : i32
    %c0_i32_1 = arith.constant 0 : i32
    return %c0_i32, %c0_i32_0 : i32, i32
  }
  func.func @transform_2(%arg0: i32) -> (i32, i32, i32) {
    %c0_i32 = arith.constant 0 : i32
    %c0_i32_0 = arith.constant 0 : i32
    %c0_i32_1 = arith.constant 0 : i32
    %c0_i32_2 = arith.constant 0 : i32
    return %c0_i32, %c0_i32_0, %c0_i32_1 : i32, i32, i32
  }
  func.func @transform_3(%arg0: i32) -> (i32, i32, i32) {
    %c0_i32 = arith.constant 0 : i32
    %c0_i32_0 = arith.constant 0 : i32
    %c0_i32_1 = arith.constant 0 : i32
    %c0_i32_2 = arith.constant 0 : i32
    return %c0_i32, %c0_i32_0, %c0_i32_1 : i32, i32, i32
  }
  func.func @transform_4(%arg0: i32) -> (i32, i32, i32) {
    %c0_i32 = arith.constant 0 : i32
    %c0_i32_0 = arith.constant 0 : i32
    %c0_i32_1 = arith.constant 0 : i32
    %c0_i32_2 = arith.constant 0 : i32
    return %c0_i32, %c0_i32_0, %c0_i32_1 : i32, i32, i32
  }
  func.func @transform_5(%arg0: i32) -> (i32, i32, i32) {
    %c0_i32 = arith.constant 0 : i32
    %c0_i32_0 = arith.constant 0 : i32
    %c0_i32_1 = arith.constant 0 : i32
    %c0_i32_2 = arith.constant 0 : i32
    return %c0_i32, %c0_i32_0, %c0_i32_1 : i32, i32, i32
  }
  func.func @transform_6(%arg0: i32) -> (i32, i32) {
    %c0_i32 = arith.constant 0 : i32
    %c0_i32_0 = arith.constant 0 : i32
    %c0_i32_1 = arith.constant 0 : i32
    return %c0_i32, %c0_i32_0 : i32, i32
  }
  func.func @transform_7(%arg0: i32) -> (i32, i32) {
    %c0_i32 = arith.constant 0 : i32
    %c0_i32_0 = arith.constant 0 : i32
    %c0_i32_1 = arith.constant 0 : i32
    return %c0_i32, %c0_i32_0 : i32, i32
  }
}

</mosaic_0001>

<bundles_post_ra>
// kernel: tpu_custom_call.1
= control target key start
LH: loop header
LB: loop body
LE: loop exit
PB: predicated region body
PF: predicated region fallthrough
CT: control target
= control target key end

     0   :  { %13 = vsyncpa [#allocation3], 0  ;;  %s1029_s0 = inlined_call_operand.hbm [shape: f32[8,128], index: 0, kind: input, shape index: {}]   ;;  %s1030_s1 = inlined_call_operand.hbm [shape: f32[8,128], index: 1, kind: input, shape index: {}]   ;;  %s1031_s2 = inlined_call_operand.hbm [shape: bf16[2,128,128], index: 2, kind: input, shape index: {}]   ;;  %s1032_s3 = inlined_call_operand.hbm [shape: f32[2,2,128], index: 3, kind: input, shape index: {}]   ;;  %s1033_s4 = inlined_call_operand.hbm [shape: bf16[2,128,128], index: 4, kind: input, shape index: {}]   ;;  %s1034_s5 = inlined_call_operand.vmem [shape: f32[2,1,128], index: 5, kind: input, shape index: {}]   ;;  %s1035_s6 = inlined_call_operand.hbm [shape: f32[8,128], index: 6, kind: output, shape index: {0}]   ;;  %s1036_s7 = inlined_call_operand.hbm [shape: f32[8,128], index: 7, kind: output, shape index: {1}]  }
   0x1   :  { %14 = vsyncpa [#allocation6], 0 }
   0x2   :  { %15 = vsyncpa [#allocation9], 0 }
   0x3   :  { %16 = vsyncpa [#allocation4], 0  ;;  %s34_s26 = sshll.u32 %s1030_s1, 4  ;;  %s35_s26 = int_to_ptr.hbm [resolvable:$true] %s34_s26 }
   0x4   :  { %17 = vsyncpa [#allocation13], 0  ;;  %s950_s27 = smov [#allocation5]   ;;  %s57_s8 = sshll.u32 %s1032_s3, 4  ;;  %s58_s8 = int_to_ptr.hbm [resolvable:$true] %s57_s8 }
   0x5   :  { %s36_s28 = sshll.u32 %s950_s27, 4  ;;  %s951_s9 = smov [#allocation8]   ;;  %s37_s28 = int_to_ptr.vmem [resolvable:$true] %s36_s28 }
   0x6   :  { %39 = dma.hbm_to_vmem [thread:$0]  %s35_s26, 128, %s37_s28, [#allocation6]  }
   0x7   :  { %s59_s10 = sshll.u32 %s951_s9, 4  ;;  %s952_s11 = smov 32   ;;  %s60_s10 = int_to_ptr.vmem [resolvable:$true] %s59_s10 }
   0x8   :  { %s953_s12 = smov 2   ;;  %s23_s1 = sshll.u32 %s1029_s0, 4  ;;  %s24_s1 = int_to_ptr.hbm [resolvable:$true] %s23_s1 }
   0x9   :  { %65 = dma.hbm_to_vmem [thread:$0]  %s58_s8, 64, %s60_s10, [#allocation9], %s952_s11, %s952_s11, %s953_s12  }
   0xa   :  { %s954_s15 = smov [#allocation2]   ;;  %s44_s3 = sshll.u32 %s1031_s2, 4  ;;  %s45_s3 = int_to_ptr.hbm [resolvable:$true] %s44_s3 }
   0xb   :  { %s25_s16 = sshll.u32 %s954_s15, 4  ;;  %s955_s19 = smov [#allocation7]   ;;  %s26_s16 = int_to_ptr.vmem [resolvable:$true] %s25_s16 }
   0xc   :  { %28 = dma.hbm_to_vmem [thread:$0]  %s24_s1, 128, %s26_s16, [#allocation3]  }
   0xd   :  { %s46_s20 = sshll.u32 %s955_s19, 4  ;;  %s956_s21 = smov 64   ;;  %s47_s20 = int_to_ptr.vmem [resolvable:$true] %s46_s20 }
   0xe   :  { %s957_s22 = smov 4   ;;  %s70_s0 = sshll.u32 %s1033_s4, 4  ;;  %s71_s0 = int_to_ptr.hbm [resolvable:$true] %s70_s0 }
   0xf   :  { %52 = dma.hbm_to_vmem [thread:$0]  %s45_s3, 2048, %s47_s20, [#allocation6], %s956_s21, %s956_s21, %s957_s22  }
  0x10   :  { %s958_s25 = smov [#allocation10]  }
  0x11   :  { %s72_s26 = sshll.u32 %s958_s25, 4  ;;  %s73_s26 = int_to_ptr.vmem [resolvable:$true] %s72_s26 }
  0x12   :  { %78 = dma.hbm_to_vmem [thread:$0]  %s71_s0, 2048, %s73_s26, [#allocation9], %s956_s21, %s956_s21, %s957_s22  }
  0x13   :  { %940 = dma.done.wait [#allocation3], 128  }
  0x14   :  { %941 = vsyncadd [#allocation3], 4294967168 }
  0x15   :  { %942 = dma.done.wait [#allocation6], 2176  }
  0x16   :  { %943 = vsyncadd [#allocation6], 4294965120 }
  0x17   :  { %944 = dma.done.wait [#allocation9], 2112  }
  0x18   :  { %945 = vsyncadd [#allocation9], 4294965184  ;;  %v719_v0 = vld [vmem:[#allocation7 + $0x38] sm:$0xff]  ;;  %v718_v2 = vld [vmem:[#allocation7 + $0x30] sm:$0xff]  ;;  %v959_v20 = vmov 8.0   ;;  %s555_s9 = sshll.u32 %s1035_s6, 4  ;;  %s556_s9 = int_to_ptr.hbm [resolvable:$true] %s555_s9 }
  0x19   :  { %v735_v1 = vld [vmem:[#allocation7 + $0x78] sm:$0xff]  ;;  %167 = vmatpush.bf16.msra.mxu0 %v719_v0  ;;  %v734_v3 = vld [vmem:[#allocation7 + $0x70] sm:$0xff]  ;;  %v717_v4 = vld [vmem:[#allocation7 + $0x28] sm:$0xff]  ;;  %758 = vrcp.f32 %v959_v20  ;;  %s961_s6 = smov [#allocation12]   ;;  %s566_s13 = sshll.u32 %s1036_s7, 4  ;;  %s567_s13 = int_to_ptr.hbm [resolvable:$true] %s566_s13 }
  0x1a   :  { %393 = vmatpush.bf16.msra.mxu2 %v735_v1  ;;  %v733_v5 = vld [vmem:[#allocation7 + $0x68] sm:$0xff]  ;;  %v716_v6 = vld [vmem:[#allocation7 + $0x20] sm:$0xff]  ;;  %v715_v8 = vld [vmem:[#allocation7 + $0x18] sm:$0xff]  ;;  %s564_s10 = sshll.u32 %s961_s6, 4  ;;  %s565_s10 = int_to_ptr.vmem [resolvable:$true] %s564_s10 }
  0x1b   :  { %v732_v7 = vld [vmem:[#allocation7 + $0x60] sm:$0xff]  ;;  %v731_v9 = vld [vmem:[#allocation7 + $0x58] sm:$0xff]  ;;  %v714_v10 = vld [vmem:[#allocation7 + $0x10] sm:$0xff] }
  0x1c   :  { %v730_v11 = vld [vmem:[#allocation7 + $0x50] sm:$0xff]  ;;  %v713_v12 = vld [vmem:[#allocation7 + $0x8] sm:$0xff]  ;;  %v712_v14 = vld [vmem:[#allocation7] sm:$0xff] }
  0x1d   :  { %168 = vmatpush.bf16.msra.mxu0 %v718_v2  ;;  %v729_v13 = vld [vmem:[#allocation7 + $0x48] sm:$0xff]  ;;  %v728_v15 = vld [vmem:[#allocation7 + $0x40] sm:$0xff]  ;;  %v101_v16 = vld [vmem:[#allocation2] sm:$0xff] }
  0x1e   :  { %394 = vmatpush.bf16.msra.mxu2 %v734_v3  ;;  %v326_v17 = vld [vmem:[#allocation5] sm:$0xff]  ;;  %v102_v18 = vpack.c.bf16 %v101_v16, %v101_v16  ;;  %v725_v34 = vld [vmem:[#allocation10 + $0x28] sm:$0xff]  ;;  %v724_v42 = vld [vmem:[#allocation10 + $0x20] sm:$0xff] }
  0x1f   :  { %v327_v19 = vpack.c.bf16 %v326_v17, %v326_v17  ;;  %v759_v21 = vpop.eup %758  ;;  %v727_v24 = vld [vmem:[#allocation10 + $0x38] sm:$0xff]  ;;  %v726_v28 = vld [vmem:[#allocation10 + $0x30] sm:$0xff]  ;;  %v741_v45 = vld [vmem:[#allocation10 + $0x68] sm:$0xff] }
  0x20   :  { %v187_v22 = vmul.f32 8.0, %v759_v21  ;;  %290 = vmatpush.bf16.msra.mxu1 %v727_v24  ;;  %v743_v30 = vld [vmem:[#allocation10 + $0x78] sm:$0xff]  ;;  %vm191_vm0 = vweird.f32 %v759_v21  ;;  %v742_v38 = vld [vmem:[#allocation10 + $0x70] sm:$0xff]  ;;  %v740_v52 = vld [vmem:[#allocation10 + $0x60] sm:$0xff] }
  0x21   :  { %169 = vmatpush.bf16.msra.mxu0 %v717_v4  ;;  %512 = vmatpush.bf16.msra.mxu3 %v743_v30  ;;  %v723_v49 = vld [vmem:[#allocation10 + $0x18] sm:$0xff]  ;;  %v722_v55 = vld [vmem:[#allocation10 + $0x10] sm:$0xff]  ;;  %v721_v61 = vld [vmem:[#allocation10 + $0x8] sm:$0xff] }
  0x22   :  { %395 = vmatpush.bf16.msra.mxu2 %v733_v5  ;;  %v188_v23 = vsub.f32 1.0, %v187_v22  ;;  %v739_v58 = vld [vmem:[#allocation10 + $0x58] sm:$0xff]  ;;  %v738_v0 = vld [vmem:[#allocation10 + $0x50] sm:$0xff]  ;;  %v720_v3 = vld [vmem:[#allocation10] sm:$0xff] }
  0x23   :  { %v203_v24 = vld [vmem:[#allocation8] sm:$0x3] }
  0x24   :  { %v189_v27 = vmul.f32 %v759_v21, %v188_v23  ;;  %291 = vmatpush.bf16.msra.mxu1 %v726_v28 }
  0x25   :  { %170 = vmatpush.bf16.msra.mxu0 %v716_v6  ;;  %513 = vmatpush.bf16.msra.mxu3 %v742_v38  ;;  %v737_v6 = vld [vmem:[#allocation10 + $0x48] sm:$0xff] }
  0x26   :  { %396 = vmatpush.bf16.msra.mxu2 %v732_v7  ;;  %v190_v32 = vadd.f32 %v759_v21, %v189_v27  ;;  %v216_v27 = vperm.slane %v203_v24, 0 }
  0x28   :  { %292 = vmatpush.bf16.msra.mxu1 %v725_v34  ;;  %v192_v41 = vsel %vm191_vm0, %v759_v21, %v190_v32 }
  0x29   :  { %171 = vmatpush.bf16.msra.mxu0 %v715_v8  ;;  %514 = vmatpush.bf16.msra.mxu3 %v741_v45 }
  0x2a   :  { %397 = vmatpush.bf16.msra.mxu2 %v731_v9 }
  0x2c   :  { %293 = vmatpush.bf16.msra.mxu1 %v724_v42 }
  0x2d   :  { %172 = vmatpush.bf16.msra.mxu0 %v714_v10  ;;  %515 = vmatpush.bf16.msra.mxu3 %v740_v52 }
  0x2e   :  { %398 = vmatpush.bf16.msra.mxu2 %v730_v11  ;;  %v736_v11 = vld [vmem:[#allocation10 + $0x40] sm:$0xff] }
  0x30   :  { %294 = vmatpush.bf16.msra.mxu1 %v723_v49 }
  0x31   :  { %173 = vmatpush.bf16.msra.mxu0 %v713_v12  ;;  %516 = vmatpush.bf16.msra.mxu3 %v739_v58 }
  0x32   :  { %399 = vmatpush.bf16.msra.mxu2 %v729_v13 }
  0x34   :  { %295 = vmatpush.bf16.msra.mxu1 %v722_v55 }
  0x35   :  { %174 = vmatpush.bf16.msra.mxu0 %v712_v14  ;;  %517 = vmatpush.bf16.msra.mxu3 %v738_v0 }
  0x36   :  { %400 = vmatpush.bf16.msra.mxu2 %v728_v15 }
  0x38   :  { %175 = vmatmul.bf16.vlgmr.msra.gmra.mxu0 %v102_v18  ;;  %296 = vmatpush.bf16.msra.mxu1 %v721_v61 }
  0x39   :  { %401 = vmatmul.bf16.vlgmr.msra.gmra.mxu2 %v327_v19  ;;  %518 = vmatpush.bf16.msra.mxu3 %v737_v6 }
  0x3c   :  { %297 = vmatpush.bf16.msra.mxu1 %v720_v3 }
  0x3d   :  { %519 = vmatpush.bf16.msra.mxu3 %v736_v11 }
  0xb5   :  { %v176_v25 = vpop.f32.mrf.mxu0 }
  0xb6   :  { %v180_v26 = vrot.slane %v176_v25, 4 }
  0xb8   :  { %v181_v29 = vadd.f32 %v180_v26, %v176_v25 }
  0xba   :  { %v182_v31 = vrot.slane %v181_v29, 2 }
  0xbc   :  { %v402_v33 = vpop.f32.mrf.mxu2  ;;  %v183_v35 = vadd.f32 %v182_v31, %v181_v29  ;;  %v218_v31 = vperm.slane %v203_v24, 1 }
  0xbd   :  { %v406_v36 = vrot.slane %v402_v33, 4  ;;  %v178_v37 = vpop.f32.mrf.mxu0 }
  0xbe   :  { %v184_v39 = vrot.slane %v183_v35, 1 }
  0xbf   :  { %v407_v40 = vadd.f32 %v406_v36, %v402_v33 }
  0xc0   :  { %v185_v43 = vadd.f32 %v184_v39, %v183_v35 }
  0xc1   :  { %v408_v44 = vrot.slane %v407_v40, 2 }
  0xc2   :  { %v193_v46 = vmul.f32 %v192_v41, %v185_v43 }
  0xc3   :  { %v409_v47 = vadd.f32 %v408_v44, %v407_v40 }
  0xc4   :  { %v404_v48 = vpop.f32.mrf.mxu2  ;;  %v194_v50 = vsub.f32 %v176_v25, %v193_v46 }
  0xc5   :  { %v410_v51 = vrot.slane %v409_v47, 1 }
  0xc6   :  { %v195_v53 = vmul.f32 %v194_v50, %v194_v50 }
  0xc7   :  { %v411_v54 = vadd.f32 %v410_v51, %v409_v47  ;;  %v756_v47 = vld [vmem:[%s1034_s5] ss:$0 sm:$0xff]  ;;  %v757_v51 = vld [vmem:[%s1034_s5 + $0x1] ss:$0 sm:$0xff]  ;;  %s960_s5 = smov [#allocation11]  }
  0xc8   :  { %v196_v56 = vrot.slane %v195_v53, 4  ;;  %s553_s29 = sshll.u32 %s960_s5, 4  ;;  %s554_s29 = int_to_ptr.vmem [resolvable:$true] %s553_s29 }
  0xc9   :  { %v412_v57 = vmul.f32 %v411_v54, %v192_v41 }
  0xca   :  { %v197_v59 = vadd.f32 %v196_v56, %v195_v53 }
  0xcb   :  { %v413_v60 = vsub.f32 %v402_v33, %v412_v57  ;;  %v423_v33 = vld [vmem:[#allocation8 + $0x2] sm:$0x3] }
  0xcc   :  { %v198_v62 = vrot.slane %v197_v59, 2  ;;  %v436_v37 = vperm.slane %v423_v33, 0 }
  0xcd   :  { %v414_v63 = vmul.f32 %v413_v60, %v413_v60 }
  0xce   :  { %v199_v1 = vadd.f32 %v198_v62, %v197_v59 }
  0xcf   :  { %v415_v2 = vrot.slane %v414_v63, 4 }
  0xd0   :  { %v200_v4 = vrot.slane %v199_v1, 1 }
  0xd1   :  { %v416_v5 = vadd.f32 %v415_v2, %v414_v63 }
  0xd2   :  { %v201_v7 = vadd.f32 %v200_v4, %v199_v1 }
  0xd3   :  { %v417_v8 = vrot.slane %v416_v5, 2 }
  0xd4   :  { %v202_v9 = vmul.f32 %v201_v7, %v192_v41 }
  0xd5   :  { %v418_v10 = vadd.f32 %v417_v8, %v416_v5 }
  0xd6   :  { %v204_v12 = vadd.f32 1e-05, %v202_v9 }
  0xd7   :  { %v419_v13 = vrot.slane %v418_v10, 1 }
  0xd8   :  { %760 = vrsqrt.f32 %v204_v12  ;;  %vm211_vm2 = vweird.f32 %v204_v12 }
  0xd9   :  { %v420_v14 = vadd.f32 %v419_v13, %v418_v10 }
  0xdb   :  { %v421_v15 = vmul.f32 %v420_v14, %v192_v41  ;;  %v438_v41 = vperm.slane %v423_v33, 1 }
  0xdd   :  { %v424_v16 = vadd.f32 1e-05, %v421_v15 }
  0xde   :  { %v761_v17 = vpop.eup %760 }
  0xdf   :  { %762 = vrsqrt.f32 %v424_v16  ;;  %v206_v18 = vmul.f32 %v761_v17, %v204_v12  ;;  %vm212_vm1 = vweird.f32 %v761_v17  ;;  %vm431_vm5 = vweird.f32 %v424_v16 }
  0xe0   :  { %vm213_vm3 = vmor %vm211_vm2, %vm212_vm1 }
  0xe1   :  { %v207_v19 = vmul.f32 %v761_v17, %v206_v18 }
  0xe3   :  { %v208_v20 = vmul.f32 0.5, %v207_v19 }
  0xe5   :  { %v763_v21 = vpop.eup %762  ;;  %v209_v22 = vsub.f32 1.5, %v208_v20 }
  0xe6   :  { %v426_v23 = vmul.f32 %v763_v21, %v424_v16  ;;  %vm432_vm4 = vweird.f32 %v763_v21 }
  0xe7   :  { %v210_v25 = vmul.f32 %v761_v17, %v209_v22  ;;  %vm433_vm6 = vmor %vm431_vm5, %vm432_vm4 }
  0xe8   :  { %v427_v26 = vmul.f32 %v763_v21, %v426_v23 }
  0xe9   :  { %v214_v28 = vsel %vm213_vm3, %v761_v17, %v210_v25 }
  0xea   :  { %v428_v29 = vmul.f32 0.5, %v427_v26  ;;  %v215_v30 = vmul.f32 %v214_v28, %v194_v50 }
  0xec   :  { %v429_v32 = vsub.f32 1.5, %v428_v29  ;;  %v217_v34 = vmul.f32 %v216_v27, %v215_v30 }
  0xee   :  { %v430_v35 = vmul.f32 %v763_v21, %v429_v32  ;;  %v219_v36 = vadd.f32 %v218_v31, %v217_v34 }
  0xf0   :  { %v434_v38 = vsel %vm433_vm6, %v763_v21, %v430_v35  ;;  %v220_v40 = vmax.f32 %v219_v36, 0.0 }
  0xf1   :  { %v435_v39 = vmul.f32 %v434_v38, %v413_v60 }
  0xf2   :  { %v221_v42 = vpack.c.bf16 %v220_v40, %v220_v40 }
  0xf3   :  { %v437_v43 = vmul.f32 %v436_v37, %v435_v39 }
  0xf4   :  { %298 = vmatmul.bf16.vlgmr.msra.gmra.mxu1 %v221_v42 }
  0xf5   :  { %v439_v44 = vadd.f32 %v438_v41, %v437_v43 }
  0xf7   :  { %v440_v45 = vmax.f32 %v439_v44, 0.0 }
  0xf9   :  { %v441_v46 = vpack.c.bf16 %v440_v45, %v440_v45 }
  0xfb   :  { %520 = vmatmul.bf16.vlgmr.msra.gmra.mxu3 %v441_v46 }
 0x171   :  { %v299_v48 = vpop.f32.mrf.mxu1 }
 0x172   :  { %v300_v49 = vadd.f32 %v756_v47, %v299_v48 }
 0x174   :  { %303 = vmax.xlane.f32.xlu0 %v300_v49 }
 0x179   :  { %v301_v50 = vpop.f32.mrf.mxu1 }
 0x17e   :  { %v521_v52 = vpop.f32.mrf.mxu3 }
 0x17f   :  { %v522_v53 = vadd.f32 %v757_v51, %v521_v52 }
 0x181   :  { %525 = vmax.xlane.f32.xlu0 %v522_v53 }
 0x186   :  { %v523_v54 = vpop.f32.mrf.mxu3 }
 0x1e7   :  { %v304_v55 = vpop.xlane.xlu0 %303 }
 0x1e8   :  { %v305_v56 = vsub.f32 %v300_v49, %v304_v55 }
 0x1ea   :  { %v306_v57 = vmul.f32 1.442695, %v305_v56 }
 0x1ec   :  { %764 = vpow2.f32 %v306_v57 }
 0x1f2   :  { %v765_v58 = vpop.eup %764 }
 0x1f3   :  { %308 = vadd.xlane.f32.xlu1 %v765_v58 }
 0x1f4   :  { %v526_v59 = vpop.xlane.xlu0 %525 }
 0x1f5   :  { %v527_v60 = vsub.f32 %v522_v53, %v526_v59 }
 0x1f7   :  { %v528_v61 = vmul.f32 1.442695, %v527_v60 }
 0x1f9   :  { %766 = vpow2.f32 %v528_v61 }
 0x1ff   :  { %v767_v62 = vpop.eup %766 }
 0x200   :  { %530 = vadd.xlane.f32.xlu1 %v767_v62 }
 0x266   :  { %v309_v63 = vpop.xlane.xlu1 %308 }
 0x267   :  { %768 = vrcp.f32 %v309_v63  ;;  %v321_v3 = vand.u32 2147483648, %v309_v63  ;;  %v319_v5 = vand.u32 2147483647, %v309_v63  ;;  %vm315_vm8 = vweird.f32 %v309_v63 }
 0x269   :  { %v322_v8 = vor.u32 1.1754944e-38, %v321_v3  ;;  %vm320_vm10 = vcmp.eq.f32.partialorder %v319_v5, 8.507059e+37 }
 0x26d   :  { %v769_v0 = vpop.eup %768 }
 0x26e   :  { %v311_v1 = vmul.f32 %v769_v0, %v309_v63  ;;  %vm316_vm7 = vweird.f32 %v769_v0 }
 0x26f   :  { %vm317_vm9 = vmor %vm315_vm8, %vm316_vm7 }
 0x270   :  { %v312_v2 = vsub.f32 1.0, %v311_v1 }
 0x272   :  { %v313_v4 = vmul.f32 %v769_v0, %v312_v2 }
 0x273   :  { %v531_v6 = vpop.xlane.xlu1 %530 }
 0x274   :  { %770 = vrcp.f32 %v531_v6  ;;  %v314_v7 = vadd.f32 %v769_v0, %v313_v4  ;;  %v543_v15 = vand.u32 2147483648, %v531_v6  ;;  %v541_v17 = vand.u32 2147483647, %v531_v6 }
 0x275   :  { %vm537_vm12 = vweird.f32 %v531_v6 }
 0x276   :  { %v318_v9 = vsel %vm317_vm9, %v769_v0, %v314_v7  ;;  %v544_v19 = vor.u32 1.1754944e-38, %v543_v15  ;;  %vm542_vm14 = vcmp.eq.f32.partialorder %v541_v17, 8.507059e+37 }
 0x277   :  { %v323_v10 = vsel %vm320_vm10, %v322_v8, %v318_v9 }
 0x278   :  { %v324_v11 = vmul.f32 %v765_v58, %v323_v10 }
 0x27a   :  { %v771_v12 = vpop.eup %770  ;;  %325 = vst [vmem:[#allocation11] sm:$0xff] %v324_v11 }
 0x27b   :  { %v533_v13 = vmul.f32 %v771_v12, %v531_v6  ;;  %558 = dma.vmem_to_hbm [thread:$0]  %s554_s29, 128, %s556_s9, [#allocation4]   ;;  %vm538_vm11 = vweird.f32 %v771_v12 }
 0x27c   :  { %vm539_vm13 = vmor %vm537_vm12, %vm538_vm11 }
 0x27d   :  { %v534_v14 = vsub.f32 1.0, %v533_v13 }
 0x27f   :  { %v535_v16 = vmul.f32 %v771_v12, %v534_v14 }
 0x281   :  { %v536_v18 = vadd.f32 %v771_v12, %v535_v16 }
 0x283   :  { %v540_v20 = vsel %vm539_vm13, %v771_v12, %v536_v18 }
 0x284   :  { %v545_v21 = vsel %vm542_vm14, %v544_v19, %v540_v20 }
 0x285   :  { %v546_v22 = vmul.f32 %v767_v62, %v545_v21 }
 0x287   :  { %547 = vst [vmem:[#allocation12] sm:$0xff] %v546_v22 }
 0x288   :  { %569 = dma.vmem_to_hbm [thread:$0]  %s565_s10, 128, %s567_s13, [#allocation13]  }
 0x289   :  { %946 = dma.done.wait [#allocation4], 128  }
 0x28a   :  { %947 = vsyncadd [#allocation4], 4294967168 }
 0x28b   :  { %948 = dma.done.wait [#allocation13], 128  }
 0x28c   :  { %949 = vsyncadd [#allocation13], 4294967168 }
 0x28d   :  { %578 = vsyncpa [#allocation3], 1 }
 0x28e   :  { %579 = vsyncpa [#allocation6], 1 }
 0x28f   :  { %580 = vsyncpa [#allocation9], 1 }
 0x290   :  { %581 = vsyncpa [#allocation4], 1 }
 0x291   :  { %582 = vsyncpa [#allocation13], 1 }

</bundles_post_ra>
